<compile_context>
chip_gen: v5e
topology: v5e:2x2
jax: 0.10.0
libtpu: 0.0.40
codegen_flags: <defaults>
</compile_context>

<pallas_src>
import jax
import jax.numpy as jnp
from jax import lax
from jax.experimental import pallas as pl
from jax.experimental.pallas import tpu as pltpu


# --------------------------------------------------------------- utilities ---

def _round_up(x, m):
    return ((x + m - 1) // m) * m


def _largest_divisor_tile(dim, target, unit=128):
    """Largest multiple of `unit` that divides `dim` (a multiple of unit) and is <= target."""
    q = dim // unit
    dmax = max(1, min(target // unit, q))
    for d in range(dmax, 0, -1):
        if q % d == 0:
            return unit * d
    return unit


def _targets_and_budget():
    """Per-generation tile targets and a conservative VMEM buffer budget."""
    kind = ""
    try:
        kind = jax.devices()[0].device_kind.lower()
    except Exception:
        pass
    if "v5 lite" in kind or "v5lite" in kind or "v5e" in kind:
        # v5e: 16 MiB scoped-VMEM default -> stay well under it, do not raise the limit.
        return dict(tm=512, tk=512, tn=256, budget=12 << 20, vmem_limit=None)
    # v6e / v7x (and newer/unknown): larger tiles, modestly raised scoped limit.
    return dict(tm=1024, tk=1024, tn=256, budget=24 << 20, vmem_limit=40 << 20)


# ----------------------------------------------------------------- kernels ---

def _make_resident_kernel(k_actual, k_pad):
    """out = x @ W + b with W fully VMEM-resident; no K grid axis."""
    mask_k = (k_pad != k_actual)

    def kernel(x_ref, w_ref, b_ref, o_ref):
        x = x_ref[...]
        if mask_k:
            # The x block extends past in_features (block last dim is 128-padded);
            # zero the out-of-bounds columns so garbage never reaches the MXU.
            col = lax.broadcasted_iota(jnp.int32, x.shape, 1)
            x = jnp.where(col < k_actual, x, jnp.zeros_like(x))
        o_ref[...] = (
            jnp.dot(x, w_ref[...], preferred_element_type=jnp.float32) + b_ref[...]
        ).astype(o_ref.dtype)

    return kernel


def _make_tiled_kernel(k_actual, k_pad, tk):
    """(M,N,K)-tiled out = x @ W + b, accumulating directly into the f32 output block."""
    mask_k = (k_pad != k_actual)

    def kernel(x_ref, w_ref, b_ref, o_ref):
        k = pl.program_id(2)

        @pl.when(k == 0)
        def _():
            o_ref[...] = jnp.zeros_like(o_ref)

        x = x_ref[...]
        if mask_k:
            col = k * tk + lax.broadcasted_iota(jnp.int32, x.shape, 1)
            x = jnp.where(col < k_actual, x, jnp.zeros_like(x))

        o_ref[...] += jnp.dot(x, w_ref[...], preferred_element_type=jnp.float32)

        @pl.when(k == pl.num_programs(2) - 1)
        def _():
            o_ref[...] += b_ref[...]   # bias added once per output tile

    return kernel


# ------------------------------------------------------------------ params ---

def prepare_params(weight, bias, *, param_dtype=jnp.float32):
    """Pad + transpose parameters once, outside the hot path.

    weight: (n_classes, in_features) PyTorch layout; bias: (n_classes,).
    Returns W as (K_pad, N_pad) (MXU-native contraction layout) and bias as (1, N_pad).
    param_dtype=bfloat16 halves the W stream (feed bf16 x upstream on v5e), but
    deviates from the f32 PyTorch reference beyond ~1e-5 — keep f32 by default.
    """
    n_classes, in_features = weight.shape
    n_p = _round_up(n_classes, 128)
    k_p = _round_up(in_features, 128)
    w_p = jnp.zeros((k_p, n_p), param_dtype)
    w_p = w_p.at[:in_features, :n_classes].set(weight.T.astype(param_dtype))
    b_p = jnp.zeros((1, n_p), jnp.float32)
    b_p = b_p.at[0, :n_classes].set(bias.astype(jnp.float32))
    return w_p, b_p


# ----------------------------------------------------------------- wrapper ---

def _pallas_linear(x, w_p, b_p, n_classes, *, force_tiled=False, tk_target=None):
    """x: (batch, in_features) unpadded; w_p: (K_pad, N_pad); b_p: (1, N_pad)."""
    batch, k_actual = x.shape
    k_pad, n_p = w_p.shape
    xb = x.dtype.itemsize
    wb = w_p.dtype.itemsize
    m_align = 8 if xb >= 4 else 16          # bf16 x packs two rows per sublane
    cfg = _targets_and_budget()
    budget = cfg["budget"]
    tk_t = tk_target if tk_target is not None else cfg["tk"]

    cost = pl.CostEstimate(
        flops=2 * batch * k_pad * n_p,
        transcendentals=0,
        bytes_accessed=(batch * k_actual * xb      # x (streamed once)
                        + k_pad * n_p * wb         # weight
                        + n_p * 4                  # bias
                        + batch * n_p * 4),        # out
    )

    # ---- Path A: weight fully resident in VMEM, 1-D grid over batch tiles ----
    fixed = 2 * k_pad * n_p * wb + 2 * n_p * 4          # W + bias (counted double-buffered)
    per_row = 2 * k_pad * xb + 2 * n_p * 4              # x tile + out tile, per M row
    tm_res = None
    if (not force_tiled) and fixed + per_row * m_align <= budget:
        tm_res = min(cfg["tm"], (budget - fixed) // per_row)
        tm_res = max(m_align, (tm_res // m_align) * m_align)
        tm_res = min(tm_res, _round_up(batch, m_align))

    if tm_res is not None:
        out_p = pl.pallas_call(
            _make_resident_kernel(k_actual, k_pad),
            out_shape=jax.ShapeDtypeStruct((batch, n_p), jnp.float32),
            grid_spec=pltpu.PrefetchScalarGridSpec(
                num_scalar_prefetch=0,
                grid=(pl.cdiv(batch, tm_res),),
                in_specs=[
                    pl.BlockSpec((tm_res, k_pad), lambda i: (i, 0)),   # x, streamed once
                    pl.BlockSpec((k_pad, n_p), lambda i: (0, 0)),      # W, fetched once
                    pl.BlockSpec((1, n_p), lambda i: (0, 0)),          # bias, fetched once
                ],
                out_specs=pl.BlockSpec((tm_res, n_p), lambda i: (i, 0)),
            ),
            compiler_params=pltpu.CompilerParams(
                dimension_semantics=("parallel",),
                vmem_limit_bytes=cfg["vmem_limit"],
            ),
            cost_estimate=cost,
        )(x, w_p, b_p)
    else:
        # ---- Path B: (M, N, K) grid for very large in_features ----
        tn = _largest_divisor_tile(n_p, cfg["tn"], 128)
        tk = _largest_divisor_tile(k_pad, tk_t, 128)
        fixed_b = 2 * tk * tn * wb + 2 * tn * 4
        per_row_b = 2 * tk * xb + 2 * tn * 4
        tm = min(cfg["tm"], max(m_align, (budget - fixed_b) // per_row_b))
        tm = max(m_align, (tm // m_align) * m_align)
        tm = min(tm, _round_up(batch, m_align))

        out_p = pl.pallas_call(
            _make_tiled_kernel(k_actual, k_pad, tk),
            out_shape=jax.ShapeDtypeStruct((batch, n_p), jnp.float32),
            grid_spec=pltpu.PrefetchScalarGridSpec(
                num_scalar_prefetch=0,
                grid=(pl.cdiv(batch, tm), n_p // tn, k_pad // tk),
                in_specs=[
                    pl.BlockSpec((tm, tk), lambda i, j, k: (i, k)),    # x tile
                    pl.BlockSpec((tk, tn), lambda i, j, k: (k, j)),    # W tile (K,N)
                    pl.BlockSpec((1, tn), lambda i, j, k: (0, j)),     # bias row
                ],
                out_specs=pl.BlockSpec((tm, tn), lambda i, j, k: (i, j)),
            ),
            compiler_params=pltpu.CompilerParams(
                dimension_semantics=("parallel", "parallel", "arbitrary"),
                vmem_limit_bytes=cfg["vmem_limit"],
            ),
            cost_estimate=cost,
        )(x, w_p, b_p)

    if n_p != n_classes:
        out_p = out_p[:, :n_classes]   # drop the lane-padding columns only
    return out_p


def make_logistic_regression(weight, bias, *, param_dtype=jnp.float32):
    """Prepare params once; returns a jitted forward (addresses re-padding per call)."""
    n_classes = weight.shape[0]
    w_p, b_p = prepare_params(weight, bias, param_dtype=param_dtype)

    def fwd(x):
        return _pallas_linear(x, w_p, b_p, n_classes)

    return jax.jit(fwd)


def logistic_regression_forward(x, weight, bias):
    """One-shot convenience. For repeated inference use make_logistic_regression."""
    # TODO(synk): nn.LazyLinear's lazy in_features inference has no kernel-side
    # equivalent; parameters are materialized eagerly from `weight`/`bias` here.
    w_p, b_p = prepare_params(weight, bias)
    return _pallas_linear(x, w_p, b_p, weight.shape[0])


# -------------------------------------------------------------------- main ---

if __name__ == "__main__":
    key = jax.random.PRNGKey(0)
    k_x, k_w, k_b, k_x2, k_w2, k_b2 = jax.random.split(key, 6)

    # ---- Case 1: typical logistic-regression shapes -> resident-weight path ----
    batch, in_features, n_classes = 16, 40, 5
    x = jax.random.normal(k_x, (batch, in_features), jnp.float32)
    bound = 1.0 / jnp.sqrt(jnp.float32(in_features))
    weight = jax.random.uniform(k_w, (n_classes, in_features), jnp.float32,
                                minval=-bound, maxval=bound)
    bias = jax.random.uniform(k_b, (n_classes,), jnp.float32,
                              minval=-bound, maxval=bound)

    fwd = make_logistic_regression(weight, bias)
    out = jax.block_until_ready(fwd(x))
    ref = jnp.dot(x, weight.T, precision=lax.Precision.HIGHEST) + bias
    assert out.shape == (batch, n_classes)
    assert jnp.allclose(out, ref, atol=1e-4, rtol=1e-4)

    # Convenience one-shot wrapper agrees too.
    out_b = jax.block_until_ready(logistic_regression_forward(x, weight, bias))
    assert jnp.allclose(out_b, ref, atol=1e-4, rtol=1e-4)

    # ---- Case 2: force the K-tiled fallback path (small shapes, 2 K blocks) ----
    batch2, in_f2, n_cls2 = 8, 200, 3
    x2 = jax.random.normal(k_x2, (batch2, in_f2), jnp.float32)
    bound2 = 1.0 / jnp.sqrt(jnp.float32(in_f2))
    weight2 = jax.random.uniform(k_w2, (n_cls2, in_f2), jnp.float32,
                                 minval=-bound2, maxval=bound2)
    bias2 = jax.random.uniform(k_b2, (n_cls2,), jnp.float32,
                               minval=-bound2, maxval=bound2)
    w_p2, b_p2 = prepare_params(weight2, bias2)
    out2 = jax.block_until_ready(
        _pallas_linear(x2, w_p2, b_p2, n_cls2, force_tiled=True, tk_target=128))
    ref2 = jnp.dot(x2, weight2.T, precision=lax.Precision.HIGHEST) + bias2
    assert out2.shape == (batch2, n_cls2)
    assert jnp.allclose(out2, ref2, atol=1e-4, rtol=1e-4)

    print("KERNEL_OK")
</pallas_src>

<mosaic_0001>
module attributes {stable_mosaic.version = 11 : i64} {
  func.func @kernel(%arg0: i32, %arg1: memref<16x128xf32, #tpu.memory_space<vmem>>, %arg2: memref<128x128xf32, #tpu.memory_space<vmem>>, %arg3: memref<1x128xf32, #tpu.memory_space<vmem>>, %arg4: memref<16x128xf32, #tpu.memory_space<vmem>>) attributes {dimension_semantics = [#tpu.dimension_semantics<parallel>], iteration_bounds = array<i64: 1>, scalar_prefetch = 0 : i64, scratch_operands = 0 : i64, tpu.core_type = #tpu.core_type<tc>, window_params = [{transform_indices = @transform_0, window_bounds = array<i64: 16, 128>}, {pipeline_mode = #tpu.pipeline_mode<synchronous>, transform_indices = @transform_1, window_bounds = array<i64: 128, 128>}, {pipeline_mode = #tpu.pipeline_mode<synchronous>, transform_indices = @transform_2, window_bounds = array<i64: 1, 128>}, {transform_indices = @transform_3, window_bounds = array<i64: 16, 128>}]} {
    %c0 = arith.constant 0 : index
    %c0_0 = arith.constant 0 : index
    %0 = vector.load %arg1[%c0, %c0_0] : memref<16x128xf32, #tpu.memory_space<vmem>>, vector<16x128xf32>
    %1 = tpu.iota {dimensions = array<i32: 1>} : vector<16x128xi32>
    %c40_i32 = arith.constant 40 : i32
    %2 = vector.broadcast %c40_i32 : i32 to vector<16x128xi32>
    %3 = arith.cmpi slt, %1, %2 : vector<16x128xi32>
    %cst = arith.constant 0.000000e+00 : f32
    %4 = vector.broadcast %cst : f32 to vector<16x128xf32>
    %5 = arith.select %3, %0, %4 : vector<16x128xi1>, vector<16x128xf32>
    %c0_1 = arith.constant 0 : index
    %c0_2 = arith.constant 0 : index
    %6 = vector.load %arg2[%c0_1, %c0_2] : memref<128x128xf32, #tpu.memory_space<vmem>>, vector<128x128xf32>
    %cst_3 = arith.constant dense<0.000000e+00> : vector<16x128xf32>
    %7 = tpu.matmul %5, %6, %cst_3 {dimension_numbers = #tpu.dot_dimension_numbers<[1], [0], [0], [1], [0, 0, 1, 1], [], []>} : vector<16x128xf32>, vector<128x128xf32>, vector<16x128xf32> -> vector<16x128xf32>
    %c0_4 = arith.constant 0 : index
    %c0_5 = arith.constant 0 : index
    %8 = vector.load %arg3[%c0_4, %c0_5] : memref<1x128xf32, #tpu.memory_space<vmem>>, vector<1x128xf32>
    %9 = vector.broadcast %8 : vector<1x128xf32> to vector<16x128xf32>
    %10 = arith.addf %7, %9 : vector<16x128xf32>
    %c0_6 = arith.constant 0 : index
    %c0_7 = arith.constant 0 : index
    %11 = vector.load %arg4[%c0_6, %c0_7] : memref<16x128xf32, #tpu.memory_space<vmem>>, vector<16x128xf32>
    tpu.vector_store %arg4[%c0_6, %c0_7], %10 {strides = array<i32>} : memref<16x128xf32, #tpu.memory_space<vmem>>, vector<16x128xf32>,
    return
  }
  func.func @transform_0(%arg0: i32) -> (i32, i32) {
    %c0_i32 = arith.constant 0 : i32
    %c0_i32_0 = arith.constant 0 : i32
    return %arg0, %c0_i32 : i32, i32
  }
  func.func @transform_1(%arg0: i32) -> (i32, i32) {
    %c0_i32 = arith.constant 0 : i32
    %c0_i32_0 = arith.constant 0 : i32
    %c0_i32_1 = arith.constant 0 : i32
    return %c0_i32, %c0_i32_0 : i32, i32
  }
  func.func @transform_2(%arg0: i32) -> (i32, i32) {
    %c0_i32 = arith.constant 0 : i32
    %c0_i32_0 = arith.constant 0 : i32
    %c0_i32_1 = arith.constant 0 : i32
    return %c0_i32, %c0_i32_0 : i32, i32
  }
  func.func @transform_3(%arg0: i32) -> (i32, i32) {
    %c0_i32 = arith.constant 0 : i32
    %c0_i32_0 = arith.constant 0 : i32
    return %arg0, %c0_i32 : i32, i32
  }
}

</mosaic_0001>

<bundles_post_ra>
// kernel: fwd.1
= control target key start
LH: loop header
LB: loop body
LE: loop exit
PB: predicated region body
PF: predicated region fallthrough
CT: control target
= control target key end

     0   :  { %8 = vsyncpa [#allocation3], 0  ;;  %s218_s0 = inlined_call_operand.hbm [shape: f32[16,40], index: 0, kind: input, shape index: {}]   ;;  %s219_s1 = inlined_call_operand.hbm [shape: f32[128,128], index: 1, kind: input, shape index: {}]   ;;  %s220_s2 = inlined_call_operand.vmem [shape: f32[1,128], index: 2, kind: input, shape index: {}]   ;;  %s221_s3 = inlined_call_operand.vmem [shape: f32[16,128], index: 3, kind: output, shape index: {}]  }
   0x1   :  { %s14_s14 = sshll.u32 %s218_s0, 4  ;;  %s15_s14 = int_to_ptr.hbm [resolvable:$true] %s14_s14 }
   0x2   :  { %9 = vsyncpa [#allocation5], 0  ;;  %s179_s15 = smov [#allocation2]   ;;  %s27_s19 = sshll.u32 %s219_s1, 4  ;;  %s28_s19 = int_to_ptr.hbm [resolvable:$true] %s27_s19 }
   0x3   :  { %s16_s16 = sshll.u32 %s179_s15, 4  ;;  %s180_s20 = smov 128   ;;  %s17_s16 = int_to_ptr.vmem [resolvable:$true] %s16_s16 }
   0x4   :  { %s181_s21 = smov 8   ;;  %s182_s22 = smov [#allocation4]  }
   0x5   :  { %22 = dma.hbm_to_vmem [thread:$0]  %s15_s14, 256, %s17_s16, [#allocation3], %s180_s20, %s180_s20, %s181_s21  }
   0x6   :  { %s29_s23 = sshll.u32 %s182_s22, 4  ;;  %s30_s23 = int_to_ptr.vmem [resolvable:$true] %s29_s23 }
   0x7   :  { %35 = dma.hbm_to_vmem [thread:$0]  %s28_s19, 2048, %s30_s23, [#allocation5], %s180_s20, %s180_s20, %s181_s21  }
   0x8   :  { %175 = dma.done.wait [#allocation3], 256  }
   0x9   :  { %176 = vsyncadd [#allocation3], 4294967040 }
   0xa   :  { %177 = dma.done.wait [#allocation5], 2048  }
   0xb   :  { %178 = vsyncadd [#allocation5], 4294965248  ;;  %v68_v0 = vld [vmem:[#allocation4 + $0x78] sm:$0xff]  ;;  %v67_v1 = vld [vmem:[#allocation4 + $0x70] sm:$0xff]  ;;  %v48_v12 = vlaneseq }
   0xc   :  { %73 = vmatpush.msra.mxu0 %v68_v0  ;;  %106 = vmatpush.msra.mxu1 %v68_v0  ;;  %v66_v2 = vld [vmem:[#allocation4 + $0x68] sm:$0xff]  ;;  %v65_v3 = vld [vmem:[#allocation4 + $0x60] sm:$0xff]  ;;  %v64_v4 = vld [vmem:[#allocation4 + $0x58] sm:$0xff] }
   0xd   :  { %v63_v5 = vld [vmem:[#allocation4 + $0x50] sm:$0xff]  ;;  %v62_v6 = vld [vmem:[#allocation4 + $0x48] sm:$0xff]  ;;  %v61_v7 = vld [vmem:[#allocation4 + $0x40] sm:$0xff]  ;;  %v49_v15 = vand.u32 127, %v48_v12 }
   0xe   :  { %74 = vmatpush.msra.mxu0 %v67_v1  ;;  %107 = vmatpush.msra.mxu1 %v67_v1  ;;  %v60_v8 = vld [vmem:[#allocation4 + $0x38] sm:$0xff]  ;;  %v59_v9 = vld [vmem:[#allocation4 + $0x30] sm:$0xff]  ;;  %v58_v10 = vld [vmem:[#allocation4 + $0x28] sm:$0xff] }
   0xf   :  { %v57_v11 = vld [vmem:[#allocation4 + $0x20] sm:$0xff]  ;;  %v56_v13 = vld [vmem:[#allocation4 + $0x18] sm:$0xff]  ;;  %v55_v14 = vld [vmem:[#allocation4 + $0x10] sm:$0xff]  ;;  %vm50_vm0 = vcmp.lt.s32.totalorder %v49_v15, 40 }
  0x10   :  { %75 = vmatpush.msra.mxu0 %v66_v2  ;;  %108 = vmatpush.msra.mxu1 %v66_v2  ;;  %v54_v16 = vld [vmem:[#allocation4 + $0x8] sm:$0xff]  ;;  %v53_v17 = vld [vmem:[#allocation4] sm:$0xff]  ;;  %v46_v18 = vld [vmem:[#allocation2] sm:$0xff] }
  0x11   :  { %v47_v19 = vld [vmem:[#allocation2 + $0x8] sm:$0xff]  ;;  %v126_v20 = vld [vmem:[%s220_s2] ss:$0 sm:$0xff] }
  0x12   :  { %76 = vmatpush.msra.mxu0 %v65_v3  ;;  %109 = vmatpush.msra.mxu1 %v65_v3 }
  0x14   :  { %77 = vmatpush.msra.mxu0 %v64_v4  ;;  %110 = vmatpush.msra.mxu1 %v64_v4 }
  0x16   :  { %78 = vmatpush.msra.mxu0 %v63_v5  ;;  %111 = vmatpush.msra.mxu1 %v63_v5 }
  0x18   :  { %79 = vmatpush.msra.mxu0 %v62_v6  ;;  %112 = vmatpush.msra.mxu1 %v62_v6 }
  0x1a   :  { %80 = vmatpush.msra.mxu0 %v61_v7  ;;  %113 = vmatpush.msra.mxu1 %v61_v7 }
  0x1c   :  { %81 = vmatpush.msra.mxu0 %v60_v8  ;;  %114 = vmatpush.msra.mxu1 %v60_v8 }
  0x1e   :  { %82 = vmatpush.msra.mxu0 %v59_v9  ;;  %115 = vmatpush.msra.mxu1 %v59_v9 }
  0x20   :  { %83 = vmatpush.msra.mxu0 %v58_v10  ;;  %116 = vmatpush.msra.mxu1 %v58_v10 }
  0x22   :  { %84 = vmatpush.msra.mxu0 %v57_v11  ;;  %117 = vmatpush.msra.mxu1 %v57_v11 }
  0x24   :  { %85 = vmatpush.msra.mxu0 %v56_v13  ;;  %118 = vmatpush.msra.mxu1 %v56_v13 }
  0x26   :  { %86 = vmatpush.msra.mxu0 %v55_v14  ;;  %119 = vmatpush.msra.mxu1 %v55_v14 }
  0x28   :  { %87 = vmatpush.msra.mxu0 %v54_v16  ;;  %120 = vmatpush.msra.mxu1 %v54_v16 }
  0x2a   :  { %88 = vmatpush.msra.mxu0 %v53_v17  ;;  %121 = vmatpush.msra.mxu1 %v53_v17 }
  0x2b   :  { %104 = vmatmul.msk.f32.vlgmr.msra.gmra.mxu0 %vm50_vm0, %v46_v18  ;;  %105 = vmatmul.msk.f32.vlgmr.msra.gmra.mxu1 %vm50_vm0, %v47_v19 }
  0xa8   :  { %v90_v21 = vpop.f32.mrf.mxu0  ;;  %v93_v22 = vpop.f32.mrf.mxu1 }
  0xa9   :  { %v91_v23 = vadd.f32 %v126_v20, %v90_v21  ;;  %v94_v24 = vadd.f32 %v126_v20, %v93_v22 }
  0xab   :  { %96 = vst [vmem:[%s221_s3] sm:$0xff] %v91_v23 }
  0xac   :  { %97 = vst [vmem:[%s221_s3 + $0x8] sm:$0xff] %v94_v24 }
  0xad   :  { %102 = vsyncpa [#allocation3], 1 }
  0xae   :  { %103 = vsyncpa [#allocation5], 1 }

</bundles_post_ra>
